<compile_context>
chip_gen: v7x
topology: tpu7x:2x2x1
jax: 0.10.0
libtpu: 0.0.40
codegen_flags: <defaults>
</compile_context>

<pallas_src>
import functools

import jax
import jax.numpy as jnp
import numpy as np
from jax.experimental import pallas as pl
from jax.experimental.pallas import tpu as pltpu


def _round_up(x, m):
    return (x + m - 1) // m * m


# ---------------------------------------------------------------------------
# Pallas kernel 1: slot projection  proj[t] = h_slots[t] @ fc[t]
#   tiled over (slot, node-row-tile), both axes "parallel".
#   Operands arrive already in the MXU dtype (cast done once in HBM).
# ---------------------------------------------------------------------------
def slot_bmm_kernel(h_ref, w_ref, o_ref):
    o_ref[0] = jnp.dot(h_ref[0], w_ref[0], preferred_element_type=jnp.float32)


def slot_projection(h_slots, fc, *, block_n):
    T, N_pad, F = h_slots.shape
    OH = fc.shape[-1]
    Tn = block_n if (N_pad % block_n == 0) else N_pad
    return pl.pallas_call(
        slot_bmm_kernel,
        out_shape=jax.ShapeDtypeStruct((T, N_pad, OH), jnp.float32),
        grid=(T, N_pad // Tn),
        in_specs=[
            pl.BlockSpec((1, Tn, F), lambda t, n: (t, n, 0)),
            pl.BlockSpec((1, F, OH), lambda t, n: (t, 0, 0)),
        ],
        out_specs=pl.BlockSpec((1, Tn, OH), lambda t, n: (t, n, 0)),
        compiler_params=pltpu.CompilerParams(
            dimension_semantics=("parallel", "parallel"),
            vmem_limit_bytes=48 * 1024 * 1024),
    )(h_slots, fc)


# ---------------------------------------------------------------------------
# Pallas kernel 2: flash-style masked edge softmax (norm_by='dst') + weighted
# aggregation, all heads per grid step.
#   grid = (dst-tile [parallel], src-tile [arbitrary])
#   scalar prefetch: per-tile edge counts (block-sparse skip)
#   running max / denominator / accumulator live in VMEM scratch (per head).
# ---------------------------------------------------------------------------
def flash_attn_kernel(cnt_ref,                                   # SMEM prefetch
                      ee_ref, er_ref, el_ref, code_ref, feat_ref,  # inputs
                      rst_ref, lse_ref,                            # outputs
                      m_sc, l_sc, acc_sc,                          # scratch
                      *, num_heads, num_etypes, negative_slope, mxu_dtype):
    d = pl.program_id(0)
    s = pl.program_id(1)

    @pl.when(s == 0)
    def _():
        m_sc[...] = jnp.full(m_sc.shape, -1e30, jnp.float32)
        l_sc[...] = jnp.zeros(l_sc.shape, jnp.float32)
        acc_sc[...] = jnp.zeros(acc_sc.shape, jnp.float32)

    # block-sparse skip: tiles with no edges contribute nothing to the softmax.
    @pl.when(cnt_ref[d, s] > 0)
    def _():
        code = code_ref[...].astype(jnp.int32)           # (Td, Ts), -1 == no edge
        masks = [code == e for e in range(num_etypes)]   # hoisted across heads
        for h in range(num_heads):                        # static, small
            er = er_ref[h]                                # (Td, 1)  dst-side term
            el = el_ref[h]                                # (1, Ts)  src-side term

            # edge-type bias with the additive -inf mask fused in
            bias = jnp.full(code.shape, -1e30, jnp.float32)
            for e in range(num_etypes):                   # num_etypes tiny, static
                bias = jnp.where(masks[e], ee_ref[e, h], bias)

            logits = er + el + bias
            logits = jnp.where(logits > 0, logits, negative_slope * logits)

            m_prev = m_sc[h]                                               # (Td,1)
            m_new = jnp.maximum(m_prev, jnp.max(logits, axis=-1, keepdims=True))
            alpha = jnp.exp(m_prev - m_new)
            p = jnp.exp(logits - m_new)                                    # (Td,Ts)

            l_sc[h] = alpha * l_sc[h] + jnp.sum(p, axis=-1, keepdims=True)
            # TODO(synk): per-head (Td, 128) matmuls leave half of the 256-wide
            # MXU idle on v6e/v7x; p differs per head so heads cannot simply be
            # concatenated along the output dim.
            acc_sc[h] = alpha * acc_sc[h] + jnp.dot(
                p.astype(mxu_dtype), feat_ref[h],
                preferred_element_type=jnp.float32)
            m_sc[h] = m_new

    @pl.when(s == pl.num_programs(1) - 1)
    def _():
        for h in range(num_heads):
            inv_l = pl.reciprocal(l_sc[h], approx=True)   # EUP slot, ~free
            rst_ref[h] = acc_sc[h] * inv_l
            lse_ref[h] = m_sc[h] + jnp.log(l_sc[h])


def attention_aggregate(cnt_tbl, ee_types, er, el, code, feat, *,
                        Td, Ts, num_etypes, negative_slope, mxu_dtype):
    H, N_pad, S_pad = feat.shape
    nd, ns = N_pad // Td, N_pad // Ts
    kernel = functools.partial(
        flash_attn_kernel, num_heads=H, num_etypes=num_etypes,
        negative_slope=negative_slope, mxu_dtype=mxu_dtype)
    return pl.pallas_call(
        kernel,
        out_shape=(jax.ShapeDtypeStruct((H, N_pad, S_pad), jnp.float32),
                   jax.ShapeDtypeStruct((H, N_pad, 1), jnp.float32)),
        grid_spec=pltpu.PrefetchScalarGridSpec(
            num_scalar_prefetch=1,                       # per-tile edge counts
            grid=(nd, ns),
            in_specs=[
                pl.BlockSpec(memory_space=pltpu.MemorySpace.SMEM),          # ee
                pl.BlockSpec((H, Td, 1), lambda d, s, cnt: (0, d, 0)),      # er
                pl.BlockSpec((H, 1, Ts), lambda d, s, cnt: (0, 0, s)),      # el
                pl.BlockSpec((Td, Ts), lambda d, s, cnt: (d, s)),           # code
                pl.BlockSpec((H, Ts, S_pad), lambda d, s, cnt: (0, s, 0)),  # feat
            ],
            out_specs=[
                pl.BlockSpec((H, Td, S_pad), lambda d, s, cnt: (0, d, 0)),  # rst
                # TODO(synk): lse keeps a last-dim-1 (masked-store) block; it is
                # H*N*4 bytes total so the lane-dense relayout is not worth it.
                pl.BlockSpec((H, Td, 1), lambda d, s, cnt: (0, d, 0)),      # lse
            ],
            scratch_shapes=[pltpu.VMEM((H, Td, 1), jnp.float32),
                            pltpu.VMEM((H, Td, 1), jnp.float32),
                            pltpu.VMEM((H, Td, S_pad), jnp.float32)]),
        compiler_params=pltpu.CompilerParams(
            dimension_semantics=("parallel", "arbitrary"),
            vmem_limit_bytes=48 * 1024 * 1024),
    )(cnt_tbl, ee_types, er, el, code, feat)


# ---------------------------------------------------------------------------
# Full forward (plain-JAX glue around the two Pallas kernels)
# ---------------------------------------------------------------------------
def slot_gat_forward(params, feat, src, dst, etype_ids, *,
                     N, num_ntype, num_heads, out_feats,
                     semantic_trans=False, negative_slope=0.2,
                     block_d=512, block_s=1024, block_n=1024,
                     mxu_dtype=jnp.bfloat16):
    in_feats = params["fc"].shape[1]
    H = num_heads
    T = num_ntype
    S = num_ntype * out_feats
    OH = out_feats * num_heads
    num_etypes = params["edge_emb"].shape[0]

    # --- tile / padding geometry -------------------------------------------
    assert block_s % block_d == 0
    if N >= block_s:
        Ts, Td = block_s, block_d
    else:
        Ts = Td = _round_up(N, 32)      # 32: int8 sublane-pack alignment
    N_pad = _round_up(N, Ts)
    S_pad = _round_up(S, 128)           # lane-dense aggregation output
    OH_pad = _round_up(OH, 128)         # lane-dense projection output
    nd, ns = N_pad // Td, N_pad // Ts

    # --- semantic transition + slot layout (inputhead=True path) ------------
    if semantic_trans:
        st_m = jax.nn.softmax(params["semantic_transition_matrix"], axis=1)
    else:
        st_m = jnp.eye(num_ntype, dtype=jnp.float32)
    h = feat.reshape(N, 1, num_ntype, in_feats)
    h = jnp.einsum("tu,nhus->nhts", st_m, h)
    h_slots = jnp.transpose(h, (2, 0, 1, 3)).reshape(T, N, in_feats)
    h_slots = jnp.pad(h_slots, ((0, 0), (0, N_pad - N), (0, 0)))

    # --- Pallas kernel 1: slot-wise projection (MXU bmm), pre-cast operands --
    fc_p = jnp.pad(params["fc"], ((0, 0), (0, 0), (0, OH_pad - OH)))
    proj = slot_projection(h_slots.astype(mxu_dtype), fc_p.astype(mxu_dtype),
                           block_n=block_n)
    # single relayout: (T, N_pad, H*out) -> per-head slot features (H, N_pad, S)
    proj = proj[:, :, :OH].reshape(T, N_pad, H, out_feats)
    feat_hns = jnp.transpose(proj, (2, 1, 0, 3)).reshape(H, N_pad, S)

    # --- attention logit pieces (hoisted out of the kernel, f32) -------------
    attn_l = params["attn_l"][0]                             # (H, S)
    attn_r = params["attn_r"][0]
    el = jnp.einsum("hns,hs->hn", feat_hns, attn_l)          # (H, N_pad) src term
    er = jnp.einsum("hns,hs->hn", feat_hns, attn_r)          # (H, N_pad) dst term

    e_emb = params["edge_emb"]                               # (num_etypes, ef)
    ef = (e_emb @ params["fc_e"].T).reshape(num_etypes, H, e_emb.shape[1])
    ee_types = jnp.sum(ef * params["attn_e"], axis=-1)       # (num_etypes, H)

    # combined adjacency / edge-type code (rows=dst, cols=src); -1 == no edge.
    # TODO(synk): parallel (multi-)edges between one (dst, src) pair collapse here.
    code = jnp.full((N_pad, N_pad), -1, jnp.int8)
    code = code.at[dst, src].set(etype_ids.astype(jnp.int8))

    # per-tile edge counts for the block-sparse skip (scalar-prefetched to SMEM)
    cnt_tbl = (code >= 0).reshape(nd, Td, ns, Ts).sum(axis=(1, 3), dtype=jnp.int32)

    # aggregation operand stored in HBM in the MXU dtype (bf16 by default)
    feat_in = jnp.pad(feat_hns, ((0, 0), (0, 0), (0, S_pad - S))).astype(mxu_dtype)

    # --- Pallas kernel 2: flash-style masked softmax + aggregation -----------
    rst_pad, lse = attention_aggregate(
        cnt_tbl, ee_types, er[:, :, None], el[:, None, :], code, feat_in,
        Td=Td, Ts=Ts, num_etypes=num_etypes,
        negative_slope=negative_slope, mxu_dtype=mxu_dtype)

    rst = jnp.transpose(rst_pad[:, :N, :S], (1, 0, 2))       # (N, H, T*out)

    # per-edge attentions recovered from the per-dst log-sum-exp (O(E*H))
    ee_edge = ee_types[etype_ids]                            # (E, H)
    logit_e = el[:, src].T + er[:, dst].T + ee_edge
    logit_e = jnp.where(logit_e > 0, logit_e, negative_slope * logit_e)
    attentions = jnp.exp(logit_e - lse[:, dst, 0].T)[:, :, None]
    return rst, attentions


# ---------------------------------------------------------------------------
# Pure-JAX edge-list reference (for correctness check only)
# ---------------------------------------------------------------------------
def reference_forward(params, feat, src, dst, etype_ids, *,
                      N, num_ntype, num_heads, out_feats, negative_slope=0.2):
    in_feats = params["fc"].shape[1]
    h_slots = jnp.transpose(
        feat.reshape(N, 1, num_ntype, in_feats), (2, 0, 1, 3)).reshape(
            num_ntype, N, in_feats)
    proj = jnp.einsum("tnf,tfo->tno", h_slots, params["fc"])
    feat_src = jnp.transpose(proj, (1, 0, 2)).reshape(
        N, num_ntype, num_heads, out_feats)
    feat_src = jnp.transpose(feat_src, (0, 2, 1, 3)).reshape(
        N, num_heads, num_ntype * out_feats)

    e_emb = params["edge_emb"]
    ef = (e_emb @ params["fc_e"].T).reshape(e_emb.shape[0], num_heads,
                                            e_emb.shape[1])
    ee_types = jnp.sum(ef * params["attn_e"], axis=-1)
    ee_edge = ee_types[etype_ids]                              # (E, H)

    el = jnp.sum(feat_src * params["attn_l"], axis=-1)         # (N, H)
    er = jnp.sum(feat_src * params["attn_r"], axis=-1)         # (N, H)
    e = el[src] + er[dst] + ee_edge
    e = jnp.where(e > 0, e, negative_slope * e)

    emax = jax.ops.segment_max(e, dst, num_segments=N)
    p = jnp.exp(e - emax[dst])
    denom = jax.ops.segment_sum(p, dst, num_segments=N)
    a = p / denom[dst]                                         # (E, H)
    msg = feat_src[src] * a[:, :, None]
    rst = jax.ops.segment_sum(msg, dst, num_segments=N)
    return rst, a[:, :, None]


# ---------------------------------------------------------------------------
if __name__ == "__main__":
    key = jax.random.PRNGKey(0)

    def make_params(k, num_ntype, in_feats, out_feats, num_heads,
                    num_etypes, edge_feats):
        ks = jax.random.split(k, 7)
        gain = float(np.sqrt(2.0))  # nn.init.calculate_gain('relu')

        def xavier(kk, shape, fan_in, fan_out):
            std = gain * np.sqrt(2.0 / (fan_in + fan_out))
            return (jax.random.normal(kk, shape, jnp.float32) * std).astype(
                jnp.float32)

        S = out_feats * num_ntype
        return {
            "fc": xavier(ks[0], (num_ntype, in_feats, out_feats * num_heads),
                         in_feats, out_feats * num_heads),
            "attn_l": xavier(ks[1], (1, num_heads, S), num_heads * S, 1),
            "attn_r": xavier(ks[2], (1, num_heads, S), num_heads * S, 1),
            "attn_e": xavier(ks[3], (1, num_heads, edge_feats),
                             num_heads * edge_feats, 1),
            "edge_emb": jax.random.normal(ks[4], (num_etypes, edge_feats),
                                          jnp.float32),
            "fc_e": xavier(ks[5], (edge_feats * num_heads, edge_feats),
                           edge_feats, edge_feats * num_heads),
            "semantic_transition_matrix": jax.random.normal(
                ks[6], (num_ntype, num_ntype), jnp.float32),
        }

    def ring_graph(n, shifts_and_etypes):
        idx = np.arange(n)
        srcs, dsts, ets = [], [], []
        for shift, et in shifts_and_etypes:
            srcs.append(idx)
            dsts.append((idx + shift) % n)
            ets.append(np.full(n, et))
        return (jnp.asarray(np.concatenate(srcs), jnp.int32),
                jnp.asarray(np.concatenate(dsts), jnp.int32),
                jnp.asarray(np.concatenate(ets), jnp.int32))

    # ---- config 1: N=16, f32 MXU operands -----------------------------------
    N, num_ntype, in_feats, out_feats, num_heads = 16, 3, 32, 16, 2
    num_etypes, edge_feats = 3, 8
    k_p, k_f, key = jax.random.split(key, 3)
    params = make_params(k_p, num_ntype, in_feats, out_feats, num_heads,
                         num_etypes, edge_feats)
    feat = jax.random.normal(k_f, (N, num_ntype * in_feats), jnp.float32)
    # rings (+1, +2) + self loops -> no 0-in-degree nodes, no duplicate edges
    src, dst, etype_ids = ring_graph(N, [(1, 0), (2, 1), (0, 2)])

    rst, attn = slot_gat_forward(params, feat, src, dst, etype_ids,
                                 N=N, num_ntype=num_ntype, num_heads=num_heads,
                                 out_feats=out_feats, mxu_dtype=jnp.float32)
    rst = jax.block_until_ready(rst)
    attn = jax.block_until_ready(attn)

    rst_ref, attn_ref = reference_forward(params, feat, src, dst, etype_ids,
                                          N=N, num_ntype=num_ntype,
                                          num_heads=num_heads,
                                          out_feats=out_feats)
    # rst tolerance accounts for the approximate-reciprocal epilogue (~2^-12 rel)
    np.testing.assert_allclose(np.asarray(rst), np.asarray(rst_ref),
                               rtol=5e-3, atol=1e-3)
    np.testing.assert_allclose(np.asarray(attn), np.asarray(attn_ref),
                               rtol=1e-4, atol=1e-5)
    assert rst.shape == (N, num_heads, num_ntype * out_feats)
    assert attn.shape == (src.shape[0], num_heads, 1)

    # ---- config 1b: default bf16 MXU operands (f32 accumulation) ------------
    rst_bf, attn_bf = slot_gat_forward(params, feat, src, dst, etype_ids,
                                       N=N, num_ntype=num_ntype,
                                       num_heads=num_heads,
                                       out_feats=out_feats,
                                       mxu_dtype=jnp.bfloat16)
    rst_bf = jax.block_until_ready(rst_bf)
    np.testing.assert_allclose(np.asarray(rst_bf), np.asarray(rst_ref),
                               rtol=2e-1, atol=1e-1)
    np.testing.assert_allclose(np.asarray(attn_bf), np.asarray(attn_ref),
                               rtol=2e-1, atol=1e-1)

    # ---- config 2: N=20 (node padding inside a single tile) -----------------
    N2 = 20
    k_f2, key = jax.random.split(key)
    feat2 = jax.random.normal(k_f2, (N2, num_ntype * in_feats), jnp.float32)
    src2, dst2, et2 = ring_graph(N2, [(1, 0), (3, 1), (0, 2)])
    rst2, attn2 = slot_gat_forward(params, feat2, src2, dst2, et2,
                                   N=N2, num_ntype=num_ntype,
                                   num_heads=num_heads, out_feats=out_feats,
                                   mxu_dtype=jnp.float32)
    rst2 = jax.block_until_ready(rst2)
    rst2_ref, attn2_ref = reference_forward(params, feat2, src2, dst2, et2,
                                            N=N2, num_ntype=num_ntype,
                                            num_heads=num_heads,
                                            out_feats=out_feats)
    np.testing.assert_allclose(np.asarray(rst2), np.asarray(rst2_ref),
                               rtol=5e-3, atol=1e-3)
    np.testing.assert_allclose(np.asarray(attn2), np.asarray(attn2_ref),
                               rtol=1e-4, atol=1e-5)

    # ---- config 3: N=200 with 128-tiles — exercises multi-tile online softmax,
    #      the parallel dst grid axis, node padding and the block-sparse skip
    #      (one fully-empty (dst-tile, src-tile) pair).
    N3 = 200
    k_f3, key = jax.random.split(key)
    feat3 = jax.random.normal(k_f3, (N3, num_ntype * in_feats), jnp.float32)
    idx3 = np.arange(N3)
    src3 = jnp.asarray(np.concatenate([idx3, idx3[:-1]]), jnp.int32)       # self + path
    dst3 = jnp.asarray(np.concatenate([idx3, idx3[:-1] + 1]), jnp.int32)
    et3 = jnp.asarray(np.concatenate([np.full(N3, 2), idx3[:-1] % 2]), jnp.int32)
    rst3, attn3 = slot_gat_forward(params, feat3, src3, dst3, et3,
                                   N=N3, num_ntype=num_ntype,
                                   num_heads=num_heads, out_feats=out_feats,
                                   block_d=128, block_s=128,
                                   mxu_dtype=jnp.float32)
    rst3 = jax.block_until_ready(rst3)
    rst3_ref, attn3_ref = reference_forward(params, feat3, src3, dst3, et3,
                                            N=N3, num_ntype=num_ntype,
                                            num_heads=num_heads,
                                            out_feats=out_feats)
    np.testing.assert_allclose(np.asarray(rst3), np.asarray(rst3_ref),
                               rtol=5e-3, atol=1e-3)
    np.testing.assert_allclose(np.asarray(attn3), np.asarray(attn3_ref),
                               rtol=1e-4, atol=1e-5)

    print("KERNEL_OK")
</pallas_src>

<mosaic_0001>
module attributes {stable_mosaic.version = 11 : i64} {
  func.func @slot_bmm_kernel(%arg0: i32, %arg1: i32, %arg2: memref<1x32x32xf32, #tpu.memory_space<vmem>>, %arg3: memref<1x32x128xf32, #tpu.memory_space<vmem>>, %arg4: memref<1x32x128xf32, #tpu.memory_space<vmem>>) attributes {dimension_semantics = [#tpu.dimension_semantics<parallel>, #tpu.dimension_semantics<parallel>], iteration_bounds = array<i64: 3, 1>, scalar_prefetch = 0 : i64, scratch_operands = 0 : i64, tpu.core_type = #tpu.core_type<tc>, window_params = [{transform_indices = @transform_0, window_bounds = array<i64: 1, 32, 32>}, {transform_indices = @transform_1, window_bounds = array<i64: 1, 32, 128>}, {transform_indices = @transform_2, window_bounds = array<i64: 1, 32, 128>}]} {
    %c0 = arith.constant 0 : index
    %c0_0 = arith.constant 0 : index
    %c0_1 = arith.constant 0 : index
    %0 = vector.load %arg2[%c0, %c0_0, %c0_1] : memref<1x32x32xf32, #tpu.memory_space<vmem>>, vector<1x32x32xf32>
    %1 = vector.shape_cast %0 : vector<1x32x32xf32> to vector<32x32xf32>
    %c0_2 = arith.constant 0 : index
    %c0_3 = arith.constant 0 : index
    %c0_4 = arith.constant 0 : index
    %2 = vector.load %arg3[%c0_2, %c0_3, %c0_4] : memref<1x32x128xf32, #tpu.memory_space<vmem>>, vector<1x32x128xf32>
    %3 = vector.shape_cast %2 : vector<1x32x128xf32> to vector<32x128xf32>
    %cst = arith.constant dense<0.000000e+00> : vector<32x128xf32>
    %4 = tpu.matmul %1, %3, %cst {dimension_numbers = #tpu.dot_dimension_numbers<[1], [0], [0], [1], [0, 0, 1, 1], [], []>} : vector<32x32xf32>, vector<32x128xf32>, vector<32x128xf32> -> vector<32x128xf32>
    %c0_5 = arith.constant 0 : index
    %c0_6 = arith.constant 0 : index
    %c0_7 = arith.constant 0 : index
    %5 = vector.load %arg4[%c0_5, %c0_6, %c0_7] : memref<1x32x128xf32, #tpu.memory_space<vmem>>, vector<1x32x128xf32>
    %6 = vector.shape_cast %5 : vector<1x32x128xf32> to vector<32x128xf32>
    %7 = vector.shape_cast %4 : vector<32x128xf32> to vector<1x32x128xf32>
    tpu.vector_store %arg4[%c0_5, %c0_6, %c0_7], %7 {strides = array<i32>} : memref<1x32x128xf32, #tpu.memory_space<vmem>>, vector<1x32x128xf32>,
    return
  }
  func.func @transform_0(%arg0: i32, %arg1: i32) -> (i32, i32, i32) {
    %c0_i32 = arith.constant 0 : i32
    %c0_i32_0 = arith.constant 0 : i32
    return %arg0, %arg1, %c0_i32 : i32, i32, i32
  }
  func.func @transform_1(%arg0: i32, %arg1: i32) -> (i32, i32, i32) {
    %c0_i32 = arith.constant 0 : i32
    %c0_i32_0 = arith.constant 0 : i32
    %c0_i32_1 = arith.constant 0 : i32
    return %arg0, %c0_i32, %c0_i32_0 : i32, i32, i32
  }
  func.func @transform_2(%arg0: i32, %arg1: i32) -> (i32, i32, i32) {
    %c0_i32 = arith.constant 0 : i32
    %c0_i32_0 = arith.constant 0 : i32
    return %arg0, %arg1, %c0_i32 : i32, i32, i32
  }
}

</mosaic_0001>

<bundles_post_ra>
// kernel: tpu_custom_call.1
= control target key start
LH: loop header
LB: loop body
LE: loop exit
PB: predicated region body
PF: predicated region fallthrough
CT: control target
= control target key end

     0   :  { %7 = vsyncpa [#allocation3], 0  ;;  %s1002_s0 = inlined_call_operand.hbm [shape: f32[3,32,32], index: 0, kind: input, shape index: {}]   ;;  %s1003_s1 = inlined_call_operand.hbm [shape: f32[3,32,128], index: 1, kind: input, shape index: {}]   ;;  %s1004_s2 = inlined_call_operand.hbm [shape: f32[3,32,128], index: 2, kind: output, shape index: {}]  }
   0x1   :  { %9 = vsyncpa [#allocation3 + $0x1], 0 }
   0x2   :  { %10 = vsyncpa [#allocation6], 0 }
   0x3   :  { %12 = vsyncpa [#allocation6 + $0x1], 0 }
   0x4   :  { %13 = vsyncpa [#allocation4], 0 }
   0x5   :  { %15 = vsyncpa [#allocation4 + $0x1], 0  ;;  %s759_s9 = smov 0   ;;  %s761_s10 = smov 0  }
   0x6   :  { %s763_s11 = smov 0   ;;  %s765_s12 = smov 0  }
   0x7   :  { %s767_s13 = smov 0   ;;  %s769_s14 = smov 0  }
   0x8 LB: > { %s458_s15 = sadd.s32 4294967295, %s735_s14   ;;  %s459_s16 = sadd.s32 4294967294, %s735_s14   ;;  %s735_s14 = sphi %s769_s14, %s21_s14   ;;  %s731_s13 = sphi %s767_s13, %s1021_s13   ;;  %s727_s12 = sphi %s765_s12, %s1020_s12   ;;  %s723_s11 = sphi %s763_s11, %s1019_s11   ;;  %s719_s10 = sphi %s761_s10, %s1018_s10   ;;  %s715_s9 = sphi %s759_s9, %s1017_s9  }
   0x9   : > { %s33_s17 = sadd.s32 1, %s731_s13  ;;  %s42_s18 = sadd.s32 1, %s723_s11 }
   0xa   : > { %p35_p0 = scmp.ge.s32.totalorder %s33_s17, 3  ;;  %p49_p1 = scmp.ne.s32.totalorder %s723_s11, %s719_s10 }
   0xb   : > { %p50_p2 = scmp.eq.s32.totalorder %s735_s14, 0  ;;  %p55_p3 = scmp.ne.s32.totalorder %s719_s10, %s715_s9 }
   0xc   : > { %s1023_s17 = smov (%p35_p0, %s33_s17), 0  ;;  %p56_p5 = scmp.eq.s32.totalorder %s458_s15, 0 }
   0xd   : > { %p800_p4 = por %p50_p2, %p49_p1  ;;  %s37_s20 = ssub.s32 %s731_s13, %s1023_s17 }
   0xe   : > { %p107_p6 = scmp.eq.s32.totalorder %s458_s15, 2  ;;  %p40_p7 = scmp.eq.s32.totalorder %s37_s20, 0 }
   0xf   : > { %p806_p8 = por %p56_p5, %p55_p3  ;;  %p113_p10 = scmp.eq.s32.totalorder %s459_s16, 2 }
  0x10   : > { %p810_p9 = por %p107_p6, %p49_p1  ;;  %p535_p12 = scmp.lt.s32.totalorder %s735_s14, 3 }
  0x11   : > { %s1008_s21 = scalar_select %p806_p8, 1, 0 }
  0x12   : > { %s1009_s22 = scalar_select %p810_p9, 1, 0 }
  0x13   : > { %s815_s23 = scalar_select %p40_p7, %s723_s11, %s42_s18  }
  0x14   : > { %p817_p11 = por %p113_p10, %p55_p3  ;;  %s823_s25 = sand.u32 1, %s723_s11  }
  0x15   : > { %s462_s26 = sshll.u32 %s823_s25, 5  ;;  %s481_s27 = sshll.u32 %s731_s13, 9 }
  0x16   : > { %s1010_s24 = scalar_select %p817_p11, 1, 0 }
  0x17   : > { %s832_s30 = scalar_lea.hbm %s1002_s0, %s481_s27  ;;  %s137_s3 = scalar_lea.vmem [#allocation2], %s462_s26 }
  0x18   : > { %s146_s4 = sshll.u32 %s137_s3, 4  ;;  %p840_p13 = pnand %p535_p12, %p800_p4  ;;  %s836_s4 = int_to_ptr.vmem [resolvable:$true] %s146_s4 }
  0x19   : > { %s134_s6 = scalar_lea.sflag [#allocation3], %s823_s25  ;;  %s589_s7 = scalar_lea.hbm %s832_s30, 512 }
  0x1a   : > { %p590_p1 = scmp.ne.s32.totalorder %s832_s30, %s589_s7  ;;  %p591_p2 = pneg %p840_p13 }
  0x1b   : > { %s594_s16 = scalar_lea.hbm %s1002_s0, 1536  ;;  %p595_p4 = scmp.lt.u32.totalorder %s832_s30, %s1002_s0 }
  0x1c   : > { %p592_p3 = pnand %p591_p2, %p590_p1  ;;  %p596_p6 = scmp.lt.u32.totalorder %s594_s16, %s589_s7 }
  0x1d   : > { %p598_p10 = scmp.lt.u32.totalorder %s589_s7, %s832_s30 }
  0x1e   : > { %p593_p5 = pneg %p592_p3  ;;  %p597_p7 = por %p596_p6, %p595_p4 }
  0x20   : > { %p599_p12 = por %p598_p10, %p597_p7 }
  0x22   : > { %p600_p0 = pnand %p599_p12, %p593_p5 }
  0x24   : > { %603 = shalt.err (!%p600_p0)
}
  0x25   : > { %s604_s20 = scalar_lea.vmem %s836_s4, 512  ;;  %s737_s28 = smov [#allocation2]  }
  0x26   : > { %p605_p1 = scmp.ne.s32.totalorder %s836_s4, %s604_s20  ;;  %s609_s29 = sshll.u32 %s737_s28, 4  ;;  %s610_s29 = int_to_ptr.vmem [resolvable:$false] %s609_s29 }
  0x27   : > { %s611_s3 = scalar_lea.vmem %s610_s29, 1024  ;;  %p612_p9 = scmp.lt.s32.totalorder %s836_s4, %s610_s29 }
  0x28   : > { %p607_p3 = pnand %p605_p1, %p591_p2  ;;  %p613_p4 = scmp.lt.s32.totalorder %s611_s3, %s604_s20 }
  0x2a   : > { %p608_p11 = pneg %p607_p3  ;;  %p614_p6 = por %p613_p4, %p612_p9 }
  0x2c   : > { %p615_p7 = pnand %p614_p6, %p608_p11 }
  0x2e   : > { %618 = shalt.err (!%p615_p7)
}
  0x2f   : > { %s738_s7 = smov 128   ;;  %s739_s8 = smov 8  }
  0x30   : > { %527 = dma.hbm_to_vmem [thread:$0]  (!%p840_p13), %s832_s30, 512, %s836_s4, %s134_s6, %s738_s7, %s738_s7, %s739_s8  }
  0x31   : > { %p175_p9 = scmp.lt.s32.totalorder %s735_s14, 4  ;;  %s882_s18 = scalar_lea.hbm %s1003_s1, %s481_s27 }
  0x32   : > { %p1012_p11 = scmp.ge.s32.totalorder %s735_s14, 1  ;;  %s160_s20 = scalar_lea.vmem [#allocation5], %s462_s26 }
  0x33   : > { %s167_s28 = sshll.u32 %s160_s20, 4  ;;  %s157_s30 = scalar_lea.sflag [#allocation6], %s823_s25  ;;  %s892_s28 = int_to_ptr.vmem [resolvable:$true] %s167_s28 }
  0x34   : > { %p886_p0 = pnand %p1012_p11, %p175_p9  ;;  %s619_s4 = scalar_lea.hbm %s882_s18, 512 }
  0x35   : > { %p620_p5 = scmp.ne.s32.totalorder %s882_s18, %s619_s4  ;;  %s624_s29 = scalar_lea.hbm %s1003_s1, 1536 }
  0x36   : > { %p625_p1 = scmp.lt.u32.totalorder %s882_s18, %s1003_s1  ;;  %p626_p3 = scmp.lt.u32.totalorder %s624_s29, %s619_s4 }
  0x37   : > { %p622_p10 = pnand %p620_p5, %p591_p2  ;;  %p628_p6 = scmp.lt.u32.totalorder %s619_s4, %s882_s18 }
  0x38   : > { %p627_p4 = por %p626_p3, %p625_p1 }
  0x39   : > { %p623_p12 = pneg %p622_p10 }
  0x3a   : > { %p629_p7 = por %p628_p6, %p627_p4 }
  0x3c   : > { %p630_p9 = pnand %p629_p7, %p623_p12 }
  0x3e   : > { %633 = shalt.err (!%p630_p9)
}
  0x3f   : > { %s634_s26 = scalar_lea.vmem %s892_s28, 512  ;;  %s740_s16 = smov [#allocation5]  }
  0x40   : > { %p635_p11 = scmp.ne.s32.totalorder %s892_s28, %s634_s26  ;;  %s639_s20 = sshll.u32 %s740_s16, 4  ;;  %s640_s20 = int_to_ptr.vmem [resolvable:$false] %s639_s20 }
  0x41   : > { %s641_s27 = scalar_lea.vmem %s640_s20, 1024  ;;  %p642_p8 = scmp.lt.s32.totalorder %s892_s28, %s640_s20 }
  0x42   : > { %p637_p5 = pnand %p635_p11, %p591_p2  ;;  %p643_p1 = scmp.lt.s32.totalorder %s641_s27, %s634_s26 }
  0x44   : > { %p638_p10 = pneg %p637_p5  ;;  %p644_p3 = por %p643_p1, %p642_p8 }
  0x46   : > { %p645_p4 = pnand %p644_p3, %p638_p10 }
  0x48   : > { %648 = shalt.err (!%p645_p4)
}
  0x49   : > { %530 = dma.hbm_to_vmem [thread:$0]  (!%p840_p13), %s882_s18, 512, %s892_s28, %s157_s30, %s738_s7, %s738_s7, %s739_s8  }
  0x4a   : > { %179 = sbr.rel (%p886_p0) target bundleno = 324 (0x144), region = 28  ;;  %s926_s4 = sand.u32 (!%p886_p0), 1, %s719_s10  }
  0x4b   : > { %s929_s6 = sshll.u32 (!%p886_p0), %s926_s4, 5  ;;  %s182_s5 = scalar_lea.sflag (!%p886_p0), [#allocation3], %s926_s4 }
  0x4c   : > { %s185_s29 = scalar_lea.vmem (!%p886_p0), [#allocation2], %s929_s6  ;;  %p1014_p8 = scmp.ne.s32.totalorder (!%p886_p0), %s1008_s21, 0 }
  0x51   : > { %702 = dma.done.wait (%p1014_p8), %s182_s5, 512  }
  0x52   : > { %704 = vsyncadd (%p1014_p8), %s182_s5, 4294966784  ;;  %s191_s25 = scalar_lea.sflag [#allocation6], %s926_s4  ;;  %s194_s7 = scalar_lea.vmem [#allocation5], %s929_s6 }
  0x53   : > { %706 = dma.done.wait (%p1014_p8), %s191_s25, 512  }
  0x54   : > { %708 = vsyncadd (%p1014_p8), %s191_s25, 4294966784  ;;  %vm230_vm0 = vcmask 261120   ;;  %v226_v0 = vld [vmem:[%s194_s7] sm:$0xff]  ;;  %v227_v1 = vld [vmem:[%s194_s7 + $0x8] sm:$0xff]  ;;  %s219_s21 = scalar_lea.vmem [#allocation7], %s929_s6  ;;  %s483_s18 = sshll.u32 %s727_s12, 9 }
  0x55   : > { %v228_v2 = vld [vmem:[%s194_s7 + $0x10] sm:$0xff]  ;;  %v506_v3 = vpack.c.bf16 %v227_v1, %v226_v0  ;;  %v229_v4 = vld [vmem:[%s194_s7 + $0x18] sm:$0xff]  ;;  %v222_v5 = vld [vmem:[%s185_s29] sm:$0xff]  ;;  %s348_s8 = sshll.u32 %s219_s21, 4  ;;  %s954_s30 = scalar_lea.hbm %s1004_s2, %s483_s18  ;;  %s949_s8 = int_to_ptr.vmem [resolvable:$true] %s348_s8 }
  0x56   : > { %v224_v6 = vld [vmem:[%s185_s29 + $0x10] sm:$0xff]  ;;  %v510_v7 = vpack.c.bf16 %v229_v4, %v228_v2  ;;  %500 = vmatprep.mubr.msk.f32.mxu0 %vm230_vm0, %v222_v5  ;;  %v223_v8 = vld [vmem:[%s185_s29 + $0x8] sm:$0xff]  ;;  %v225_v9 = vld [vmem:[%s185_s29 + $0x18] sm:$0xff]  ;;  %s333_s3 = scalar_lea.sflag [#allocation4], %s926_s4  ;;  %s649_s12 = scalar_lea.vmem %s949_s8, 512 }
  0x57   : > { %503 = vmatprep.mubr.msk.f32.mxu1 %vm230_vm0, %v224_v6  ;;  %507 = vmatprep.subr.bf16.mxu0 %v506_v3  ;;  %p650_p13 = scmp.ne.s32.totalorder %s949_s8, %s649_s12  ;;  %p1015_p2 = scmp.ne.s32.totalorder %s1009_s22, 0 }
  0x58   : > { %514 = vmatprep.subr.bf16.mxu1 %v506_v3  ;;  %509 = vmatpush3.bf16.msra.mxu0 %v506_v3  ;;  %s741_s15 = smov [#allocation7]  }
  0x59   : > { %516 = vmatpush3.bf16.msra.mxu1 %v506_v3  ;;  %511 = vmatprep.subr.bf16.mxu0 %v510_v7  ;;  %p651_p0 = pnand %p650_p13, %p1015_p2  ;;  %s653_s26 = sshll.u32 %s741_s15, 4  ;;  %s654_s26 = int_to_ptr.vmem [resolvable:$false] %s653_s26 }
  0x5a   : > { %515 = vmatprep.subr.bf16.mxu1 %v510_v7  ;;  %s655_s16 = scalar_lea.vmem %s654_s26, 1024  ;;  %p656_p6 = scmp.lt.s32.totalorder %s949_s8, %s654_s26 }
  0x5b   : > { %p652_p12 = pneg %p651_p0  ;;  %p657_p7 = scmp.lt.s32.totalorder %s655_s16, %s649_s12 }
  0x5c   : > { %513 = vmatpush3.bf16.msra.mxu0 %v510_v7 }
  0x5d   : > { %517 = vmatpush3.bf16.msra.mxu1 %v510_v7  ;;  %p658_p9 = por %p657_p7, %p656_p6 }
  0x5f   : > { %501 = vmatmul.mubr.msk.f32.vlgmr.msra.gmra.mrb[0].mxu0 %vm230_vm0, %v223_v8  ;;  %p659_p11 = pnand %p658_p9, %p652_p12 }
  0x60   : > { %504 = vmatmul.mubr.msk.f32.vlgmr.msra.gmra.mrb[0].mxu1 %vm230_vm0, %v225_v9 }
 0x132   : > { %v502_v10 = vpop.f32.mrb[0].mxu0 }
 0x133   : > { %v505_v11 = vpop.f32.mrb[0].mxu1  ;;  %329 = vst [vmem:[%s219_s21 + $0x8] sm:$0xff] %v502_v10  ;;  %v309_v12 = vpop.f32.mrb[1].mxu0 }
 0x134   : > { %331 = vst [vmem:[%s219_s21 + $0x18] sm:$0xff] %v505_v11  ;;  %v319_v13 = vpop.f32.mrb[1].mxu1  ;;  %328 = vst [vmem:[%s219_s21] sm:$0xff] %v309_v12 }
 0x135   : > { %330 = vst [vmem:[%s219_s21 + $0x10] sm:$0xff] %v319_v13 }
 0x136   : > { %662 = shalt.err (!%p659_p11)
}
 0x137   : > { %s663_s20 = scalar_lea.hbm %s954_s30, 512  ;;  %s667_s5 = scalar_lea.hbm %s1004_s2, 1536 }
 0x138   : > { %p664_p5 = scmp.ne.s32.totalorder %s954_s30, %s663_s20  ;;  %p668_p3 = scmp.lt.u32.totalorder %s954_s30, %s1004_s2 }
 0x139   : > { %p669_p4 = scmp.lt.u32.totalorder %s667_s5, %s663_s20  ;;  %p671_p13 = scmp.lt.u32.totalorder %s663_s20, %s954_s30 }
 0x13a   : > { %p665_p10 = pnand %p664_p5, %p1015_p2 }
 0x13b   : > { %p670_p8 = por %p669_p4, %p668_p3 }
 0x13c   : > { %p666_p1 = pneg %p665_p10 }
 0x13d   : > { %p672_p0 = por %p671_p13, %p670_p8 }
 0x13f   : > { %p673_p12 = pnand %p672_p0, %p666_p1 }
 0x141   : > { %676 = shalt.err (!%p673_p12)
}
 0x142   : > { %s742_s7 = smov 128   ;;  %s743_s21 = smov 8  }
 0x143   : > { %522 = dma.vmem_to_hbm [thread:$0]  (%p1015_p2), %s949_s8, 512, %s954_s30, %s333_s3, %s742_s7, %s742_s7, %s743_s21  }
 0x144 PF: > { %p536_p6 = scmp.ge.s32.totalorder %s735_s14, 2  ;;  %s363_s18 = sand.u32 1, %s715_s9  }
 0x145   : > { %p1016_p7 = scmp.ne.s32.totalorder %s1010_s24, 0  ;;  %s364_s19 = scalar_lea.sflag [#allocation4], %s363_s18 }
 0x147   : > { %p532_p9 = pnand %p536_p6, %p1016_p7 }
 0x149   : > { %710 = dma.done.wait (!%p532_p9), %s364_s19, 512  }
 0x14a   : > { %712 = vsyncadd (!%p532_p9), %s364_s19, 4294966784  ;;  %s21_s14 = sadd.s32 1, %s735_s14   ;;  %s1017_s9 = smov %s719_s10 }
 0x14b   : > { %p18_p11 = scmp.ge.s32.totalorder %s21_s14, 5   ;;  %s1018_s10 = smov %s723_s11 }
 0x14c   : > { %s1019_s11 = smov %s815_s23  ;;  %s1020_s12 = smov %s731_s13 }
 0x14d   : > { %s1021_s13 = smov %s1023_s17  ;;  %20 = sbr.rel (!%p18_p11) target bundleno = 8 (0x8), region = 86 }
 0x154   :  { %369 = vsyncpa [#allocation3], 1 }
 0x155   :  { %371 = vsyncpa [#allocation3 + $0x1], 1 }
 0x156   :  { %372 = vsyncpa [#allocation6], 1 }
 0x157   :  { %374 = vsyncpa [#allocation6 + $0x1], 1 }
 0x158   :  { %375 = vsyncpa [#allocation4], 1 }
 0x159   :  { %377 = vsyncpa [#allocation4 + $0x1], 1 }

</bundles_post_ra>
